<compile_context>
chip_gen: v7x
topology: tpu7x:2x2x1
jax: 0.10.0
libtpu: 0.0.40
codegen_flags: <defaults>
</compile_context>

<pallas_src>
import functools

import numpy as np
import jax
import jax.numpy as jnp
from jax.experimental import pallas as pl
from jax.experimental.pallas import tpu as pltpu

# ---------------- model hyper-parameters (small, consistent with module) ----
SKILL_NUM = 8          # N  (number of skill nodes)
EMBED_DIM = 32         # E  (embed_dim)
SKILL_EMBED_DIM = 32   # D  (skill_embed_dim, concat -> E + D)
CLASS_NUM = 16         # C
MAX_LEN = 18           # T  (Configs.seq_len)
L_VALID = 12           # valid prefix length `l` (trace-time constant)


# ------------------------------- fused kernel -------------------------------
def _fused_kernel(x_ref, adj_ref, e1_ref, e2_ref, wt_ref,
                  amp_w_ref, amp_b_ref,
                  w1f_ref, w1e_ref, b1_ref, w2_ref, b2_ref, w3_ref, b3_ref,
                  o_ref):
    # Per-grid-step (one demand/supply branch) shapes, branch axis squeezed:
    #   x:   [N, L]   valid (unpadded) series       adj: [N, N]
    #   e1/e2: [N, D] node embeddings               wt:  [1, T] temporal weights
    #   amp_w/amp_b: [1, E]  (Linear(1,E) of the amplifier)
    #   w1f: [E, E] w1e: [D, E] b1: [1, E]   (split-K of Linear(E+D, E))
    #   w2:  [E, E] b2: [1, E]   w3: [E, C] b3: [1, C]
    #   o:   [N, C]
    x = x_ref[...]                                   # [N, L]
    wt = wt_ref[...]                                 # [1, T]
    T = wt.shape[1]
    L = x.shape[1]

    # ---- amplify folded into temporal pooling (never build [N,T,E]) --------
    # left zero-pad to T, amplify (x*w + b), pool with wt  ==
    #   (sum_{j<L} x[:,j]*wt[T-L+j]) * w_amp  +  (sum_t wt[t]) * b_amp
    wt_valid = wt[:, T - L:]                         # [1, L]  (L static)
    s = jnp.sum(x * wt_valid, axis=-1, keepdims=True)            # [N, 1]
    sum_wt = jnp.sum(wt)                                          # scalar
    t_red = s * amp_w_ref[...] + sum_wt * amp_b_ref[...]          # [N, E]

    # ---- adaptive adjacency: softmax(relu(E1 @ E2^T), axis=1) --------------
    # (recomputed per branch: a few hundred FLOPs; with "parallel" semantics on
    #  v7x each TensorCore computes its own copy concurrently.)
    logits = jnp.maximum(
        jnp.dot(e1_ref[...], e2_ref[...].T,
                preferred_element_type=jnp.float32), 0.0)          # [N, N]
    m = jnp.max(logits, axis=1, keepdims=True)
    p = jnp.exp(logits - m)
    adp = p / jnp.sum(p, axis=1, keepdims=True)       # exact divide: rows sum to 1

    # ---- graph mixing (placeholder stgnn) -----------------------------------
    feat = jnp.maximum(
        jnp.dot(adj_ref[...] + adp, t_red,
                preferred_element_type=jnp.float32), 0.0)          # [N, E]

    # ---- decoder MLP, first layer in split-K form (concat folded) ----------
    h1 = jnp.maximum(
        jnp.dot(feat, w1f_ref[...], preferred_element_type=jnp.float32)
        + jnp.dot(e1_ref[...], w1e_ref[...], preferred_element_type=jnp.float32)
        + b1_ref[...], 0.0)                                        # [N, E]
    h2 = jnp.maximum(
        jnp.dot(h1, w2_ref[...], preferred_element_type=jnp.float32)
        + b2_ref[...], 0.0)                                        # [N, E]
    lg = jnp.dot(h2, w3_ref[...], preferred_element_type=jnp.float32) \
        + b3_ref[...]                                              # [N, C]

    # log_softmax
    mm = jnp.max(lg, axis=-1, keepdims=True)
    lse = mm + jnp.log(jnp.sum(jnp.exp(lg - mm), axis=-1, keepdims=True))
    o_ref[...] = lg - lse


# --------------------------- fused pallas_call wrapper -----------------------
def fused_forward(x, adj, e1, e2, wt, amp_w, amp_b,
                  w1f, w1e, b1, w2, b2, w3, b3):
    two, n, L = x.shape
    d = e1.shape[1]
    e = amp_w.shape[-1]
    c = w3.shape[-1]
    t = wt.shape[-1]

    def per_branch(*trail):
        n_trail = len(trail)
        return pl.BlockSpec((None,) + tuple(trail),
                            lambda b: (b,) + (0,) * n_trail)

    def shared(*dims):
        n_dims = len(dims)
        return pl.BlockSpec(tuple(dims), lambda b: (0,) * n_dims)

    args = (x, adj, e1, e2, wt, amp_w, amp_b, w1f, w1e, b1, w2, b2, w3, b3)
    flops = 2 * 2 * n * (d * n + n * e + e * e + d * e + e * e + e * c)
    transc = 2 * (n * n + n * c + n)
    bytes_acc = sum(int(np.prod(a.shape)) * 4 for a in args) + 2 * n * c * 4

    return pl.pallas_call(
        _fused_kernel,
        out_shape=jax.ShapeDtypeStruct((2, n, c), jnp.float32),
        grid=(2,),
        in_specs=[
            per_branch(n, L),       # x        [2, N, L]
            per_branch(n, n),       # adj      [2, N, N]
            shared(n, d),           # e1       [N, D]
            shared(n, d),           # e2       [N, D]
            shared(1, t),           # wt       [1, T]
            per_branch(1, e),       # amp_w    [2, 1, E]
            per_branch(1, e),       # amp_b    [2, 1, E]
            per_branch(e, e),       # w1f      [2, E, E]
            per_branch(d, e),       # w1e      [2, D, E]
            per_branch(1, e),       # b1       [2, 1, E]
            per_branch(e, e),       # w2       [2, E, E]
            per_branch(1, e),       # b2       [2, 1, E]
            per_branch(e, c),       # w3       [2, E, C]
            per_branch(1, c),       # b3       [2, 1, C]
        ],
        out_specs=per_branch(n, c),  # [2, N, C] packed output slab
        compiler_params=pltpu.CompilerParams(
            dimension_semantics=("parallel",)),
        cost_estimate=pl.CostEstimate(
            flops=flops, transcendentals=transc, bytes_accessed=bytes_acc),
    )(*args)


# ------------------------------- forward ------------------------------------
@functools.partial(jax.jit, static_argnums=3)
def graph_baseline_forward(params, d_x_full, s_x_full, l, g_d, g_s):
    # `l` is a trace-time constant (as in the harness). The left zero-pad of
    # the PyTorch code is folded into the kernel's temporal pooling.
    x = jnp.stack([d_x_full[:, :l], s_x_full[:, :l]])     # [2, N, l]
    adj = jnp.stack([g_d, g_s])                            # [2, N, N]
    out = fused_forward(
        x, adj, params["node_emb1"], params["node_emb2"], params["w_time"],
        params["amp_w"], params["amp_b"],
        params["w1f"], params["w1e"], params["b1"],
        params["w2"], params["b2"], params["w3"], params["b3"])
    d_y, s_y = out[0], out[1]
    learned_graph, loss, pred = 0, 0, 0
    return (d_y, s_y), learned_graph, loss, pred


# --------------------------- pure-JAX reference ------------------------------
def _reference_forward(params, d_x, s_x, l, g_d, g_s):
    # Unfused reference following the original module's order of ops
    # (pad -> amplify -> temporal pool -> graph mix -> concat -> MLP -> log_softmax).
    n, T = d_x.shape
    wt = params["w_time"].reshape(T, 1)
    e1, e2 = params["node_emb1"], params["node_emb2"]
    adp = jax.nn.softmax(jnp.maximum(e1 @ e2.T, 0.0), axis=1)
    outs = []
    for b, (xx, adj) in enumerate([(d_x, g_d), (s_x, g_s)]):
        xp = jnp.pad(xx[:, :l], ((0, 0), (T - l, 0)))
        amp = xp[:, :, None] * params["amp_w"][b] + params["amp_b"][b]  # [N,T,E]
        t_red = jnp.sum(amp * wt[None, :, :], axis=1)                   # [N,E]
        feat = jnp.maximum((adj + adp) @ t_red, 0.0)
        h = jnp.concatenate([feat, e1], axis=-1)
        w1 = jnp.concatenate([params["w1f"][b], params["w1e"][b]], axis=0)
        h1 = jnp.maximum(h @ w1 + params["b1"][b], 0.0)
        h2 = jnp.maximum(h1 @ params["w2"][b] + params["b2"][b], 0.0)
        lg = h2 @ params["w3"][b] + params["b3"][b]
        outs.append(jax.nn.log_softmax(lg, axis=-1))
    return outs[0], outs[1]


# ------------------------------ param init ----------------------------------
def init_params(key, n, e, d_skill, c, t):
    # Demand (index 0) and supply (index 1) parameters are stored stacked on a
    # leading size-2 axis so the fused kernel picks its branch via BlockSpec.
    ks = jax.random.split(key, 16)
    s = 0.1
    return {
        "amp_w": s * jax.random.normal(ks[0], (2, 1, e), jnp.float32),
        "amp_b": s * jax.random.normal(ks[1], (2, 1, e), jnp.float32),
        "node_emb1": s * jax.random.normal(ks[2], (n, d_skill), jnp.float32),
        "node_emb2": s * jax.random.normal(ks[3], (n, d_skill), jnp.float32),
        "w_time": s * jax.random.normal(ks[4], (1, t), jnp.float32),
        # MLPs (weights stored [in, out]; first layer split into feat/emb parts)
        "w1f": s * jax.random.normal(ks[5], (2, e, e), jnp.float32),
        "w1e": s * jax.random.normal(ks[6], (2, d_skill, e), jnp.float32),
        "b1": s * jax.random.normal(ks[7], (2, 1, e), jnp.float32),
        "w2": s * jax.random.normal(ks[8], (2, e, e), jnp.float32),
        "b2": s * jax.random.normal(ks[9], (2, 1, e), jnp.float32),
        "w3": s * jax.random.normal(ks[10], (2, e, c), jnp.float32),
        "b3": s * jax.random.normal(ks[11], (2, 1, c), jnp.float32),
    }


def build_dense_adjs(n, num_edges=32, seed=0):
    # Synthetic graph `g`: edges with both endpoints < n -> demand graph g_d;
    # both endpoints >= n -> supply graph g_s (shifted by n).
    # (mirrors the edge-filter + geo_utils.to_dense_adj glue in the module)
    rng = np.random.RandomState(seed)
    edge_index = rng.randint(0, 2 * n, size=(2, num_edges))
    edge_attr = rng.rand(num_edges).astype(np.float32)
    g_d = np.zeros((n, n), np.float32)
    g_s = np.zeros((n, n), np.float32)
    for k in range(num_edges):
        u, v = edge_index[0, k], edge_index[1, k]
        if u < n and v < n:
            g_d[u, v] += edge_attr[k]
        elif u >= n and v >= n:
            g_s[u - n, v - n] += edge_attr[k]
    return jnp.asarray(g_d), jnp.asarray(g_s)


# --------------------------------- main --------------------------------------
if __name__ == "__main__":
    key = jax.random.PRNGKey(0)
    k_dx, k_sx, k_params = jax.random.split(key, 3)

    # x = (d_x, s_x): demand / supply time series per skill node, [N, max_len]
    d_x = jax.random.normal(k_dx, (SKILL_NUM, MAX_LEN), jnp.float32)
    s_x = jax.random.normal(k_sx, (SKILL_NUM, MAX_LEN), jnp.float32)

    params = init_params(k_params, SKILL_NUM, EMBED_DIM, SKILL_EMBED_DIM,
                         CLASS_NUM, MAX_LEN)
    g_d, g_s = build_dense_adjs(SKILL_NUM)

    (d_y, s_y), learned_graph, loss, pred = graph_baseline_forward(
        params, d_x, s_x, L_VALID, g_d, g_s)
    jax.block_until_ready((d_y, s_y))

    assert d_y.shape == (SKILL_NUM, CLASS_NUM)
    assert s_y.shape == (SKILL_NUM, CLASS_NUM)
    # log_softmax rows must (exp-)sum to ~1
    assert np.allclose(np.exp(np.asarray(d_y)).sum(-1), 1.0, atol=1e-4)
    assert np.allclose(np.exp(np.asarray(s_y)).sum(-1), 1.0, atol=1e-4)
    # fused kernel matches the unfused pure-JAX reference
    ref_d, ref_s = _reference_forward(params, d_x, s_x, L_VALID, g_d, g_s)
    assert np.allclose(np.asarray(d_y), np.asarray(ref_d), atol=5e-3)
    assert np.allclose(np.asarray(s_y), np.asarray(ref_s), atol=5e-3)

    print("KERNEL_OK")
</pallas_src>

<mosaic_0001>
module attributes {stable_mosaic.version = 11 : i64} {
  func.func @_fused_kernel(%arg0: i32, %arg1: memref<1x8x12xf32, #tpu.memory_space<vmem>>, %arg2: memref<1x8x8xf32, #tpu.memory_space<vmem>>, %arg3: memref<8x32xf32, #tpu.memory_space<vmem>>, %arg4: memref<8x32xf32, #tpu.memory_space<vmem>>, %arg5: memref<1x18xf32, #tpu.memory_space<vmem>>, %arg6: memref<1x1x32xf32, #tpu.memory_space<vmem>>, %arg7: memref<1x1x32xf32, #tpu.memory_space<vmem>>, %arg8: memref<1x32x32xf32, #tpu.memory_space<vmem>>, %arg9: memref<1x32x32xf32, #tpu.memory_space<vmem>>, %arg10: memref<1x1x32xf32, #tpu.memory_space<vmem>>, %arg11: memref<1x32x32xf32, #tpu.memory_space<vmem>>, %arg12: memref<1x1x32xf32, #tpu.memory_space<vmem>>, %arg13: memref<1x32x16xf32, #tpu.memory_space<vmem>>, %arg14: memref<1x1x16xf32, #tpu.memory_space<vmem>>, %arg15: memref<1x8x16xf32, #tpu.memory_space<vmem>>) attributes {dimension_semantics = [#tpu.dimension_semantics<parallel>], iteration_bounds = array<i64: 2>, scalar_prefetch = 0 : i64, scratch_operands = 0 : i64, tpu.core_type = #tpu.core_type<tc>, window_params = [{transform_indices = @transform_0, window_bounds = array<i64: 1, 8, 12>}, {transform_indices = @transform_1, window_bounds = array<i64: 1, 8, 8>}, {pipeline_mode = #tpu.pipeline_mode<synchronous>, transform_indices = @transform_2, window_bounds = array<i64: 8, 32>}, {pipeline_mode = #tpu.pipeline_mode<synchronous>, transform_indices = @transform_3, window_bounds = array<i64: 8, 32>}, {pipeline_mode = #tpu.pipeline_mode<synchronous>, transform_indices = @transform_4, window_bounds = array<i64: 1, 18>}, {transform_indices = @transform_5, window_bounds = array<i64: 1, 1, 32>}, {transform_indices = @transform_6, window_bounds = array<i64: 1, 1, 32>}, {transform_indices = @transform_7, window_bounds = array<i64: 1, 32, 32>}, {transform_indices = @transform_8, window_bounds = array<i64: 1, 32, 32>}, {transform_indices = @transform_9, window_bounds = array<i64: 1, 1, 32>}, {transform_indices = @transform_10, window_bounds = array<i64: 1, 32, 32>}, {transform_indices = @transform_11, window_bounds = array<i64: 1, 1, 32>}, {transform_indices = @transform_12, window_bounds = array<i64: 1, 32, 16>}, {transform_indices = @transform_13, window_bounds = array<i64: 1, 1, 16>}, {transform_indices = @transform_14, window_bounds = array<i64: 1, 8, 16>}]} {
    %c0 = arith.constant 0 : index
    %c0_0 = arith.constant 0 : index
    %c0_1 = arith.constant 0 : index
    %0 = vector.load %arg1[%c0, %c0_0, %c0_1] : memref<1x8x12xf32, #tpu.memory_space<vmem>>, vector<1x8x12xf32>
    %1 = vector.shape_cast %0 : vector<1x8x12xf32> to vector<8x12xf32>
    %c0_2 = arith.constant 0 : index
    %c0_3 = arith.constant 0 : index
    %2 = vector.load %arg5[%c0_2, %c0_3] : memref<1x18xf32, #tpu.memory_space<vmem>>, vector<1x18xf32>
    %3 = vector.extract_strided_slice %2 {offsets = [0, 6], sizes = [1, 12], strides = [1, 1]} : vector<1x18xf32> to vector<1x12xf32>
    %4 = vector.broadcast %3 : vector<1x12xf32> to vector<8x12xf32>
    %5 = arith.mulf %1, %4 : vector<8x12xf32>
    %cst = arith.constant dense<0.000000e+00> : vector<8xf32>
    %6 = vector.multi_reduction <add>, %5, %cst [1] : vector<8x12xf32> to vector<8xf32>
    %7 = vector.shape_cast %6 : vector<8xf32> to vector<8x1xf32>
    %8 = vector.shape_cast %2 : vector<1x18xf32> to vector<1x1x18xf32>
    %cst_4 = arith.constant dense<0.000000e+00> : vector<1xf32>
    %9 = vector.multi_reduction <add>, %8, %cst_4 [1, 2] : vector<1x1x18xf32> to vector<1xf32>
    %10 = vector.shape_cast %9 : vector<1xf32> to vector<1x1x1xf32>
    %11 = vector.extract %10[0, 0, 0] : f32 from vector<1x1x1xf32>
    %c0_5 = arith.constant 0 : index
    %c0_6 = arith.constant 0 : index
    %c0_7 = arith.constant 0 : index
    %12 = vector.load %arg6[%c0_5, %c0_6, %c0_7] : memref<1x1x32xf32, #tpu.memory_space<vmem>>, vector<1x1x32xf32>
    %13 = vector.shape_cast %12 : vector<1x1x32xf32> to vector<1x32xf32>
    %14 = vector.broadcast %7 : vector<8x1xf32> to vector<8x32xf32>
    %15 = vector.broadcast %13 : vector<1x32xf32> to vector<8x32xf32>
    %16 = arith.mulf %14, %15 : vector<8x32xf32>
    %c0_8 = arith.constant 0 : index
    %c0_9 = arith.constant 0 : index
    %c0_10 = arith.constant 0 : index
    %17 = vector.load %arg7[%c0_8, %c0_9, %c0_10] : memref<1x1x32xf32, #tpu.memory_space<vmem>>, vector<1x1x32xf32>
    %18 = vector.shape_cast %17 : vector<1x1x32xf32> to vector<1x32xf32>
    %19 = vector.broadcast %11 : f32 to vector<1x32xf32>
    %20 = arith.mulf %19, %18 : vector<1x32xf32>
    %21 = vector.broadcast %20 : vector<1x32xf32> to vector<8x32xf32>
    %22 = arith.addf %16, %21 : vector<8x32xf32>
    %c0_11 = arith.constant 0 : index
    %c0_12 = arith.constant 0 : index
    %23 = vector.load %arg3[%c0_11, %c0_12] : memref<8x32xf32, #tpu.memory_space<vmem>>, vector<8x32xf32>
    %c0_13 = arith.constant 0 : index
    %c0_14 = arith.constant 0 : index
    %24 = vector.load %arg4[%c0_13, %c0_14] : memref<8x32xf32, #tpu.memory_space<vmem>>, vector<8x32xf32>
    %25 = tpu.transpose %24, [1, 0] : vector<8x32xf32> -> vector<32x8xf32>
    %cst_15 = arith.constant dense<0.000000e+00> : vector<8x8xf32>
    %26 = tpu.matmul %23, %25, %cst_15 {dimension_numbers = #tpu.dot_dimension_numbers<[1], [0], [0], [1], [0, 0, 1, 1], [], []>} : vector<8x32xf32>, vector<32x8xf32>, vector<8x8xf32> -> vector<8x8xf32>
    %cst_16 = arith.constant 0.000000e+00 : f32
    %27 = vector.broadcast %cst_16 : f32 to vector<8x8xf32>
    %28 = arith.maximumf %26, %27 : vector<8x8xf32>
    %cst_17 = arith.constant dense<0xFF800000> : vector<8xf32>
    %29 = vector.multi_reduction <maximumf>, %28, %cst_17 [1] : vector<8x8xf32> to vector<8xf32>
    %30 = vector.shape_cast %29 : vector<8xf32> to vector<8x1xf32>
    %31 = vector.broadcast %30 : vector<8x1xf32> to vector<8x8xf32>
    %32 = arith.subf %28, %31 : vector<8x8xf32>
    %33 = math.exp %32 : vector<8x8xf32>
    %cst_18 = arith.constant dense<0.000000e+00> : vector<8xf32>
    %34 = vector.multi_reduction <add>, %33, %cst_18 [1] : vector<8x8xf32> to vector<8xf32>
    %35 = vector.shape_cast %34 : vector<8xf32> to vector<8x1xf32>
    %36 = vector.broadcast %35 : vector<8x1xf32> to vector<8x8xf32>
    %37 = arith.divf %33, %36 : vector<8x8xf32>
    %c0_19 = arith.constant 0 : index
    %c0_20 = arith.constant 0 : index
    %c0_21 = arith.constant 0 : index
    %38 = vector.load %arg2[%c0_19, %c0_20, %c0_21] : memref<1x8x8xf32, #tpu.memory_space<vmem>>, vector<1x8x8xf32>
    %39 = vector.shape_cast %38 : vector<1x8x8xf32> to vector<8x8xf32>
    %40 = arith.addf %39, %37 : vector<8x8xf32>
    %cst_22 = arith.constant dense<0.000000e+00> : vector<8x32xf32>
    %41 = tpu.matmul %40, %22, %cst_22 {dimension_numbers = #tpu.dot_dimension_numbers<[1], [0], [0], [1], [0, 0, 1, 1], [], []>} : vector<8x8xf32>, vector<8x32xf32>, vector<8x32xf32> -> vector<8x32xf32>
    %cst_23 = arith.constant 0.000000e+00 : f32
    %42 = vector.broadcast %cst_23 : f32 to vector<8x32xf32>
    %43 = arith.maximumf %41, %42 : vector<8x32xf32>
    %c0_24 = arith.constant 0 : index
    %c0_25 = arith.constant 0 : index
    %c0_26 = arith.constant 0 : index
    %44 = vector.load %arg8[%c0_24, %c0_25, %c0_26] : memref<1x32x32xf32, #tpu.memory_space<vmem>>, vector<1x32x32xf32>
    %45 = vector.shape_cast %44 : vector<1x32x32xf32> to vector<32x32xf32>
    %cst_27 = arith.constant dense<0.000000e+00> : vector<8x32xf32>
    %46 = tpu.matmul %43, %45, %cst_27 {dimension_numbers = #tpu.dot_dimension_numbers<[1], [0], [0], [1], [0, 0, 1, 1], [], []>} : vector<8x32xf32>, vector<32x32xf32>, vector<8x32xf32> -> vector<8x32xf32>
    %c0_28 = arith.constant 0 : index
    %c0_29 = arith.constant 0 : index
    %47 = vector.load %arg3[%c0_28, %c0_29] : memref<8x32xf32, #tpu.memory_space<vmem>>, vector<8x32xf32>
    %c0_30 = arith.constant 0 : index
    %c0_31 = arith.constant 0 : index
    %c0_32 = arith.constant 0 : index
    %48 = vector.load %arg9[%c0_30, %c0_31, %c0_32] : memref<1x32x32xf32, #tpu.memory_space<vmem>>, vector<1x32x32xf32>
    %49 = vector.shape_cast %48 : vector<1x32x32xf32> to vector<32x32xf32>
    %cst_33 = arith.constant dense<0.000000e+00> : vector<8x32xf32>
    %50 = tpu.matmul %47, %49, %cst_33 {dimension_numbers = #tpu.dot_dimension_numbers<[1], [0], [0], [1], [0, 0, 1, 1], [], []>} : vector<8x32xf32>, vector<32x32xf32>, vector<8x32xf32> -> vector<8x32xf32>
    %51 = arith.addf %46, %50 : vector<8x32xf32>
    %c0_34 = arith.constant 0 : index
    %c0_35 = arith.constant 0 : index
    %c0_36 = arith.constant 0 : index
    %52 = vector.load %arg10[%c0_34, %c0_35, %c0_36] : memref<1x1x32xf32, #tpu.memory_space<vmem>>, vector<1x1x32xf32>
    %53 = vector.shape_cast %52 : vector<1x1x32xf32> to vector<1x32xf32>
    %54 = vector.broadcast %53 : vector<1x32xf32> to vector<8x32xf32>
    %55 = arith.addf %51, %54 : vector<8x32xf32>
    %cst_37 = arith.constant 0.000000e+00 : f32
    %56 = vector.broadcast %cst_37 : f32 to vector<8x32xf32>
    %57 = arith.maximumf %55, %56 : vector<8x32xf32>
    %c0_38 = arith.constant 0 : index
    %c0_39 = arith.constant 0 : index
    %c0_40 = arith.constant 0 : index
    %58 = vector.load %arg11[%c0_38, %c0_39, %c0_40] : memref<1x32x32xf32, #tpu.memory_space<vmem>>, vector<1x32x32xf32>
    %59 = vector.shape_cast %58 : vector<1x32x32xf32> to vector<32x32xf32>
    %cst_41 = arith.constant dense<0.000000e+00> : vector<8x32xf32>
    %60 = tpu.matmul %57, %59, %cst_41 {dimension_numbers = #tpu.dot_dimension_numbers<[1], [0], [0], [1], [0, 0, 1, 1], [], []>} : vector<8x32xf32>, vector<32x32xf32>, vector<8x32xf32> -> vector<8x32xf32>
    %c0_42 = arith.constant 0 : index
    %c0_43 = arith.constant 0 : index
    %c0_44 = arith.constant 0 : index
    %61 = vector.load %arg12[%c0_42, %c0_43, %c0_44] : memref<1x1x32xf32, #tpu.memory_space<vmem>>, vector<1x1x32xf32>
    %62 = vector.shape_cast %61 : vector<1x1x32xf32> to vector<1x32xf32>
    %63 = vector.broadcast %62 : vector<1x32xf32> to vector<8x32xf32>
    %64 = arith.addf %60, %63 : vector<8x32xf32>
    %cst_45 = arith.constant 0.000000e+00 : f32
    %65 = vector.broadcast %cst_45 : f32 to vector<8x32xf32>
    %66 = arith.maximumf %64, %65 : vector<8x32xf32>
    %c0_46 = arith.constant 0 : index
    %c0_47 = arith.constant 0 : index
    %c0_48 = arith.constant 0 : index
    %67 = vector.load %arg13[%c0_46, %c0_47, %c0_48] : memref<1x32x16xf32, #tpu.memory_space<vmem>>, vector<1x32x16xf32>
    %68 = vector.shape_cast %67 : vector<1x32x16xf32> to vector<32x16xf32>
    %cst_49 = arith.constant dense<0.000000e+00> : vector<8x16xf32>
    %69 = tpu.matmul %66, %68, %cst_49 {dimension_numbers = #tpu.dot_dimension_numbers<[1], [0], [0], [1], [0, 0, 1, 1], [], []>} : vector<8x32xf32>, vector<32x16xf32>, vector<8x16xf32> -> vector<8x16xf32>
    %c0_50 = arith.constant 0 : index
    %c0_51 = arith.constant 0 : index
    %c0_52 = arith.constant 0 : index
    %70 = vector.load %arg14[%c0_50, %c0_51, %c0_52] : memref<1x1x16xf32, #tpu.memory_space<vmem>>, vector<1x1x16xf32>
    %71 = vector.shape_cast %70 : vector<1x1x16xf32> to vector<1x16xf32>
    %72 = vector.broadcast %71 : vector<1x16xf32> to vector<8x16xf32>
    %73 = arith.addf %69, %72 : vector<8x16xf32>
    %cst_53 = arith.constant dense<0xFF800000> : vector<8xf32>
    %74 = vector.multi_reduction <maximumf>, %73, %cst_53 [1] : vector<8x16xf32> to vector<8xf32>
    %75 = vector.shape_cast %74 : vector<8xf32> to vector<8x1xf32>
    %76 = vector.broadcast %75 : vector<8x1xf32> to vector<8x16xf32>
    %77 = arith.subf %73, %76 : vector<8x16xf32>
    %78 = math.exp %77 : vector<8x16xf32>
    %cst_54 = arith.constant dense<0.000000e+00> : vector<8xf32>
    %79 = vector.multi_reduction <add>, %78, %cst_54 [1] : vector<8x16xf32> to vector<8xf32>
    %80 = vector.shape_cast %79 : vector<8xf32> to vector<8x1xf32>
    %81 = math.log %80 : vector<8x1xf32>
    %82 = arith.addf %75, %81 : vector<8x1xf32>
    %83 = vector.broadcast %82 : vector<8x1xf32> to vector<8x16xf32>
    %84 = arith.subf %73, %83 : vector<8x16xf32>
    %c0_55 = arith.constant 0 : index
    %c0_56 = arith.constant 0 : index
    %c0_57 = arith.constant 0 : index
    %85 = vector.load %arg15[%c0_55, %c0_56, %c0_57] : memref<1x8x16xf32, #tpu.memory_space<vmem>>, vector<1x8x16xf32>
    %86 = vector.shape_cast %85 : vector<1x8x16xf32> to vector<8x16xf32>
    %87 = vector.shape_cast %84 : vector<8x16xf32> to vector<1x8x16xf32>
    tpu.vector_store %arg15[%c0_55, %c0_56, %c0_57], %87 {strides = array<i32>} : memref<1x8x16xf32, #tpu.memory_space<vmem>>, vector<1x8x16xf32>,
    return
  }
  func.func @transform_0(%arg0: i32) -> (i32, i32, i32) {
    %c0_i32 = arith.constant 0 : i32
    %c0_i32_0 = arith.constant 0 : i32
    %c0_i32_1 = arith.constant 0 : i32
    return %arg0, %c0_i32, %c0_i32_0 : i32, i32, i32
  }
  func.func @transform_1(%arg0: i32) -> (i32, i32, i32) {
    %c0_i32 = arith.constant 0 : i32
    %c0_i32_0 = arith.constant 0 : i32
    %c0_i32_1 = arith.constant 0 : i32
    return %arg0, %c0_i32, %c0_i32_0 : i32, i32, i32
  }
  func.func @transform_2(%arg0: i32) -> (i32, i32) {
    %c0_i32 = arith.constant 0 : i32
    %c0_i32_0 = arith.constant 0 : i32
    %c0_i32_1 = arith.constant 0 : i32
    return %c0_i32, %c0_i32_0 : i32, i32
  }
  func.func @transform_3(%arg0: i32) -> (i32, i32) {
    %c0_i32 = arith.constant 0 : i32
    %c0_i32_0 = arith.constant 0 : i32
    %c0_i32_1 = arith.constant 0 : i32
    return %c0_i32, %c0_i32_0 : i32, i32
  }
  func.func @transform_4(%arg0: i32) -> (i32, i32) {
    %c0_i32 = arith.constant 0 : i32
    %c0_i32_0 = arith.constant 0 : i32
    %c0_i32_1 = arith.constant 0 : i32
    return %c0_i32, %c0_i32_0 : i32, i32
  }
  func.func @transform_5(%arg0: i32) -> (i32, i32, i32) {
    %c0_i32 = arith.constant 0 : i32
    %c0_i32_0 = arith.constant 0 : i32
    %c0_i32_1 = arith.constant 0 : i32
    return %arg0, %c0_i32, %c0_i32_0 : i32, i32, i32
  }
  func.func @transform_6(%arg0: i32) -> (i32, i32, i32) {
    %c0_i32 = arith.constant 0 : i32
    %c0_i32_0 = arith.constant 0 : i32
    %c0_i32_1 = arith.constant 0 : i32
    return %arg0, %c0_i32, %c0_i32_0 : i32, i32, i32
  }
  func.func @transform_7(%arg0: i32) -> (i32, i32, i32) {
    %c0_i32 = arith.constant 0 : i32
    %c0_i32_0 = arith.constant 0 : i32
    %c0_i32_1 = arith.constant 0 : i32
    return %arg0, %c0_i32, %c0_i32_0 : i32, i32, i32
  }
  func.func @transform_8(%arg0: i32) -> (i32, i32, i32) {
    %c0_i32 = arith.constant 0 : i32
    %c0_i32_0 = arith.constant 0 : i32
    %c0_i32_1 = arith.constant 0 : i32
    return %arg0, %c0_i32, %c0_i32_0 : i32, i32, i32
  }
  func.func @transform_9(%arg0: i32) -> (i32, i32, i32) {
    %c0_i32 = arith.constant 0 : i32
    %c0_i32_0 = arith.constant 0 : i32
    %c0_i32_1 = arith.constant 0 : i32
    return %arg0, %c0_i32, %c0_i32_0 : i32, i32, i32
  }
  func.func @transform_10(%arg0: i32) -> (i32, i32, i32) {
    %c0_i32 = arith.constant 0 : i32
    %c0_i32_0 = arith.constant 0 : i32
    %c0_i32_1 = arith.constant 0 : i32
    return %arg0, %c0_i32, %c0_i32_0 : i32, i32, i32
  }
  func.func @transform_11(%arg0: i32) -> (i32, i32, i32) {
    %c0_i32 = arith.constant 0 : i32
    %c0_i32_0 = arith.constant 0 : i32
    %c0_i32_1 = arith.constant 0 : i32
    return %arg0, %c0_i32, %c0_i32_0 : i32, i32, i32
  }
  func.func @transform_12(%arg0: i32) -> (i32, i32, i32) {
    %c0_i32 = arith.constant 0 : i32
    %c0_i32_0 = arith.constant 0 : i32
    %c0_i32_1 = arith.constant 0 : i32
    return %arg0, %c0_i32, %c0_i32_0 : i32, i32, i32
  }
  func.func @transform_13(%arg0: i32) -> (i32, i32, i32) {
    %c0_i32 = arith.constant 0 : i32
    %c0_i32_0 = arith.constant 0 : i32
    %c0_i32_1 = arith.constant 0 : i32
    return %arg0, %c0_i32, %c0_i32_0 : i32, i32, i32
  }
  func.func @transform_14(%arg0: i32) -> (i32, i32, i32) {
    %c0_i32 = arith.constant 0 : i32
    %c0_i32_0 = arith.constant 0 : i32
    %c0_i32_1 = arith.constant 0 : i32
    return %arg0, %c0_i32, %c0_i32_0 : i32, i32, i32
  }
}

</mosaic_0001>

<bundles_post_ra>
// kernel: graph_baseline_forward.1
= control target key start
LH: loop header
LB: loop body
LE: loop exit
PB: predicated region body
PF: predicated region fallthrough
CT: control target
= control target key end

     0   :  { %s2601_s0 = inlined_call_operand.vmem [shape: f32[2,8,12], index: 0, kind: input, shape index: {}]   ;;  %s2602_s1 = inlined_call_operand.vmem [shape: f32[2,8,8], index: 1, kind: input, shape index: {}]   ;;  %s2603_s2 = inlined_call_operand.hbm [shape: f32[8,32], index: 2, kind: input, shape index: {}]   ;;  %s2604_s3 = inlined_call_operand.hbm [shape: f32[8,32], index: 3, kind: input, shape index: {}]   ;;  %s2605_s4 = inlined_call_operand.hbm [shape: f32[1,18], index: 4, kind: input, shape index: {}]   ;;  %s2606_s5 = inlined_call_operand.hbm [shape: f32[2,1,32], index: 5, kind: input, shape index: {}]   ;;  %s2607_s6 = inlined_call_operand.hbm [shape: f32[2,1,32], index: 6, kind: input, shape index: {}]   ;;  %s2608_s7 = inlined_call_operand.vmem [shape: f32[2,32,32], index: 7, kind: input, shape index: {}]   ;;  %s2609_s8 = inlined_call_operand.vmem [shape: f32[2,32,32], index: 8, kind: input, shape index: {}]   ;;  %s2610_s9 = inlined_call_operand.hbm [shape: f32[2,1,32], index: 9, kind: input, shape index: {}]   ;;  %s2611_s10 = inlined_call_operand.vmem [shape: f32[2,32,32], index: 10, kind: input, shape index: {}]   ;;  %s2612_s11 = inlined_call_operand.hbm [shape: f32[2,1,32], index: 11, kind: input, shape index: {}]   ;;  %s2613_s12 = inlined_call_operand.vmem [shape: f32[2,32,16], index: 12, kind: input, shape index: {}]   ;;  %s2614_s13 = inlined_call_operand.hbm [shape: f32[2,1,16], index: 13, kind: input, shape index: {}]   ;;  %s2615_s14 = inlined_call_operand.vmem [shape: f32[2,8,16], index: 14, kind: output, shape index: {}]  }
   0x1   :  { %2630 = sst [smem:[#allocation23_spill]] %s2601_s0 }
   0x2   :  { %2631 = sst [smem:[#allocation24_spill]] %s2602_s1 }
   0x3   :  { %2632 = sst [smem:[#allocation25_spill]] %s2604_s3 }
   0x4   :  { %2633 = sst [smem:[#allocation26_spill]] %s2606_s5 }
   0x5   :  { %2634 = sst [smem:[#allocation27_spill]] %s2608_s7 }
   0x6   :  { %2635 = sst [smem:[#allocation28_spill]] %s2609_s8 }
   0x7   :  { %2636 = sst [smem:[#allocation29_spill]] %s2611_s10 }
   0x8   :  { %2637 = sst [smem:[#allocation30_spill]] %s2613_s12 }
   0x9   :  { %2638 = sst [smem:[#allocation31_spill]] %s2615_s14 }
   0xa   :  { %19 = vsyncpa [#allocation3], 0 }
   0xb   :  { %20 = vsyncpa [#allocation5], 0 }
   0xc   :  { %21 = vsyncpa [#allocation8], 0 }
   0xd   :  { %23 = vsyncpa [#allocation8 + $0x1], 0 }
   0xe   :  { %24 = vsyncpa [#allocation11], 0 }
   0xf   :  { %26 = vsyncpa [#allocation11 + $0x1], 0 }
  0x10   :  { %27 = vsyncpa [#allocation14], 0 }
  0x11   :  { %29 = vsyncpa [#allocation14 + $0x1], 0  ;;  %s2179_s29 = smov 0   ;;  %s2181_s30 = smov 0  }
  0x12   :  { %s2183_s15 = smov 0   ;;  %s2185_s16 = smov 0  }
  0x13 LB: > { %2639 = sst [smem:[#allocation20_spill]] %s2086_s15  ;;  %s2198_s17 = sadd.s32 4294967295, %s2090_s16   ;;  %s2090_s16 = sphi %s2185_s16, %s2674_s16   ;;  %s2086_s15 = sphi %s2183_s15, %s2676_s15   ;;  %s2082_s30 = sphi %s2181_s30, %s2678_s30   ;;  %s2078_s29 = sphi %s2179_s29, %s2677_s29  }
  0x14   : > { %s2201_s18 = sadd.s32 1, %s2090_s16   ;;  %s157_s20 = sadd.s32 1, %s2086_s15 }
  0x15   : > { %2640 = sst [smem:[#allocation21_spill]] %s2201_s18  ;;  %s154_s19 = ssub.s32 %s2090_s16, %s2201_s18 }
  0x16   : > { %p155_p0 = scmp.eq.s32.totalorder %s154_s19, 0  ;;  %p164_p1 = scmp.ne.s32.totalorder %s2086_s15, %s2082_s30 }
  0x17   : > { %p165_p2 = scmp.eq.s32.totalorder %s2090_s16, 0  ;;  %p170_p3 = scmp.ne.s32.totalorder %s2082_s30, %s2078_s29 }
  0x18   : > { %s2211_s21 = scalar_select %p155_p0, %s2086_s15, %s157_s20  }
  0x19   : > { %p2213_p4 = por %p165_p2, %p164_p1  ;;  %p2619_p5 = scmp.eq.s32.totalorder %s2198_s17, 0 }
  0x1a   : > { %2641 = sst [smem:[#allocation22_spill]] %s2211_s21  ;;  %p1558_p6 = scmp.ge.s32.totalorder %s2090_s16, 1 }
  0x1b   : > { %s2642_s22 = scalar_select %p2213_p4, 1, 0 }
  0x1c   : > { %p415_p7 = scmp.lt.s32.totalorder %s2090_s16, 3  ;;  %p2222_p8 = por %p2619_p5, %p170_p3 }
  0x1d   : > { %s2092_s25 = smov [#allocation4]   ;;  %s2241_s29 = sand.u32 1, %s2086_s15  }
  0x1e   : > { %s2643_s23 = scalar_select %p2222_p8, 1, 0 }
  0x1f   : > { %p2226_p9 = pnand %p1558_p6, %p415_p7  ;;  %s439_s26 = sshll.u32 %s2092_s25, 4  ;;  %s440_s26 = int_to_ptr.vmem [resolvable:$true] %s439_s26 }
  0x20   : > { %s2244_s19 = sshll.u32 %s2090_s16, 4  ;;  %s2646_s3 = sld [smem:[#allocation25_spill]] }
  0x21   : > { %s2644_s24 = scalar_select %p2226_p9, 1, 0 }
  0x22   : > { %p1726_p10 = pneg %p2226_p9 }
  0x24   : > { %p2236_p12 = pnand %p1726_p10, %p2619_p5 }
  0x26   : > { %s2645_s28 = scalar_select %p2236_p12, 1, 0 }
  0x27   : > { %s1806_s18 = scalar_lea.hbm %s2646_s3, 128  ;;  %p2254_p0 = pneg %p2236_p12 }
  0x28   : > { %p1807_p13 = scmp.ne.s32.totalorder %s2646_s3, %s1806_s18  ;;  %p1813_p3 = scmp.lt.u32.totalorder %s1806_s18, %s2646_s3 }
  0x29   : > { %s2647_s27 = scalar_select %p2254_p0, 1, 0 }
  0x2a   : > { %p1809_p1 = pnand %p2254_p0, %p1807_p13 }
  0x2c   : > { %p1810_p2 = pneg %p1809_p1 }
  0x2e   : > { %p1815_p6 = pnand %p1813_p3, %p1810_p2 }
  0x30   : > { %1818 = shalt.err (!%p1815_p6)
}
  0x31   : > { %s1819_s21 = scalar_lea.vmem %s440_s26, 128  ;;  %p1827_p11 = scmp.lt.s32.totalorder %s440_s26, %s440_s26 }
  0x32   : > { %p1820_p7 = scmp.ne.s32.totalorder %s440_s26, %s1819_s21  ;;  %p1828_p8 = scmp.lt.s32.totalorder %s1819_s21, %s1819_s21 }
  0x34   : > { %p1822_p10 = pnand %p1820_p7, %p2254_p0  ;;  %p1829_p9 = por %p1828_p8, %p1827_p11 }
  0x36   : > { %p1823_p5 = pneg %p1822_p10 }
  0x38   : > { %p1830_p4 = pnand %p1829_p9, %p1823_p5 }
  0x3a   : > { %1833 = shalt.err (!%p1830_p4)
}
  0x3b   : > { %1732 = dma.hbm_to_vmem [thread:$0]  (!%p2236_p12), %s2646_s3, 128, %s440_s26, [#allocation5]  }
  0x3c   : > { %s2648_s5 = sld [smem:[#allocation26_spill]]  ;;  %s478_s25 = scalar_lea.vmem [#allocation7], %s2241_s29 }
  0x3d   : > { %s485_s21 = sshll.u32 %s478_s25, 4  ;;  %p2649_p4 = scmp.ne.s32.totalorder %s2642_s22, 0  ;;  %s2277_s21 = int_to_ptr.vmem [resolvable:$true] %s485_s21 }
  0x3e   : > { %p2650_p5 = scmp.lt.s32.totalorder %s2090_s16, 2  ;;  %s2291_s12 = scalar_lea.hbm %s2610_s9, %s2244_s19 }
  0x3f   : > { %s2652_s15 = sand.u32 1, %s2090_s16  }
  0x40   : > { %p2283_p8 = pnand %p2650_p5, %p2649_p4  ;;  %s2295_s3 = scalar_lea.sflag [#allocation8], %s2652_s15 }
  0x42   : > { %s2274_s18 = scalar_lea.hbm %s2648_s5, %s2244_s19  ;;  %p2301_p11 = pneg %p2283_p8 }
  0x43   : > { %s2651_s14 = scalar_select %p2283_p8, 1, 0 }
  0x44   : > { %s1834_s10 = scalar_lea.hbm %s2274_s18, 16  ;;  %s1839_s26 = scalar_lea.hbm %s2648_s5, 32 }
  0x45   : > { %p1835_p9 = scmp.ne.s32.totalorder %s2274_s18, %s1834_s10  ;;  %p1840_p2 = scmp.lt.u32.totalorder %s2274_s18, %s2648_s5 }
  0x46   : > { %s2653_s25 = scalar_select %p2301_p11, 1, 0 }
  0x47   : > { %p1837_p13 = pnand %p2301_p11, %p1835_p9  ;;  %p1841_p3 = scmp.lt.u32.totalorder %s1839_s26, %s1834_s10 }
  0x48   : > { %p1843_p7 = scmp.lt.u32.totalorder %s1834_s10, %s2274_s18 }
  0x49   : > { %p1838_p1 = pneg %p1837_p13  ;;  %p1842_p6 = por %p1841_p3, %p1840_p2 }
  0x4b   : > { %p1844_p10 = por %p1843_p7, %p1842_p6 }
  0x4d   : > { %p1845_p4 = pnand %p1844_p10, %p1838_p1 }
  0x4f   : > { %1848 = shalt.err (!%p1845_p4)
}
  0x50   : > { %s1849_s15 = scalar_lea.vmem %s2277_s21, 16  ;;  %s2093_s1 = smov [#allocation7]  }
  0x51   : > { %p1850_p5 = scmp.ne.s32.totalorder %s2277_s21, %s1849_s15  ;;  %s1854_s22 = sshll.u32 %s2093_s1, 4  ;;  %s1855_s22 = int_to_ptr.vmem [resolvable:$false] %s1854_s22 }
  0x52   : > { %s1856_s8 = scalar_lea.vmem %s1855_s22, 32  ;;  %p1857_p12 = scmp.lt.s32.totalorder %s2277_s21, %s1855_s22 }
  0x53   : > { %p1852_p9 = pnand %p1850_p5, %p2301_p11  ;;  %p1858_p0 = scmp.lt.s32.totalorder %s1856_s8, %s1849_s15 }
  0x55   : > { %p1853_p13 = pneg %p1852_p9  ;;  %p1859_p2 = por %p1858_p0, %p1857_p12 }
  0x57   : > { %p1860_p3 = pnand %p1859_p2, %p1853_p13 }
  0x59   : > { %1863 = shalt.err (!%p1860_p3)
}
  0x5a   : > { %1739 = dma.hbm_to_vmem [thread:$0]  (!%p2283_p8), %s2274_s18, 16, %s2277_s21, %s2295_s3  }
  0x5b   : > { %s528_s10 = scalar_lea.vmem [#allocation10], %s2241_s29  ;;  %s2094_s20 = smov [#allocation2]  }
  0x5c   : > { %s535_s26 = sshll.u32 %s528_s10, 4  ;;  %s2328_s15 = sshll.u32 %s2094_s20, 4  ;;  %s2326_s26 = int_to_ptr.vmem [resolvable:$true] %s535_s26  ;;  %s429_s15 = int_to_ptr.vmem [resolvable:$true] %s2328_s15 }
  0x5d   : > { %s2654_s1 = sand.u32 1, %s2090_s16   ;;  %s1864_s8 = scalar_lea.hbm %s2291_s12, 16 }
  0x5e   : > { %s2332_s22 = scalar_lea.sflag [#allocation11], %s2654_s1  ;;  %p1865_p12 = scmp.ne.s32.totalorder %s2291_s12, %s1864_s8 }
  0x5f   : > { %s1869_s0 = scalar_lea.hbm %s2610_s9, 32  ;;  %p1870_p6 = scmp.lt.u32.totalorder %s2291_s12, %s2610_s9 }
  0x60   : > { %p1867_p0 = pnand %p1865_p12, %p2301_p11  ;;  %p1871_p7 = scmp.lt.u32.totalorder %s1869_s0, %s1864_s8 }
  0x61   : > { %p1873_p4 = scmp.lt.u32.totalorder %s1864_s8, %s2291_s12 }
  0x62   : > { %p1868_p1 = pneg %p1867_p0  ;;  %p1872_p10 = por %p1871_p7, %p1870_p6 }
  0x64   : > { %p1874_p5 = por %p1873_p4, %p1872_p10 }
  0x66   : > { %p1875_p9 = pnand %p1874_p5, %p1868_p1 }
  0x68   : > { %1878 = shalt.err (!%p1875_p9)
}
  0x69   : > { %s1879_s16 = scalar_lea.vmem %s2326_s26, 16  ;;  %s2095_s5 = smov [#allocation10]  }
  0x6a   : > { %p1880_p13 = scmp.ne.s32.totalorder %s2326_s26, %s1879_s16  ;;  %s1884_s7 = sshll.u32 %s2095_s5, 4  ;;  %s1885_s7 = int_to_ptr.vmem [resolvable:$false] %s1884_s7 }
  0x6b   : > { %s1886_s10 = scalar_lea.vmem %s1885_s7, 32  ;;  %p1887_p12 = scmp.lt.s32.totalorder %s2326_s26, %s1885_s7 }
  0x6c   : > { %p1882_p2 = pnand %p1880_p13, %p2301_p11  ;;  %p1888_p0 = scmp.lt.s32.totalorder %s1886_s10, %s1879_s16 }
  0x6e   : > { %p1883_p3 = pneg %p1882_p2  ;;  %p1889_p6 = por %p1888_p0, %p1887_p12 }
  0x70   : > { %p1890_p7 = pnand %p1889_p6, %p1883_p3 }
  0x72   : > { %1893 = shalt.err (!%p1890_p7)
}
  0x73   : > { %1745 = dma.hbm_to_vmem [thread:$0]  (!%p2283_p8), %s2291_s12, 16, %s2326_s26, %s2332_s22  }
  0x74   : > { %s1894_s1 = scalar_lea.hbm %s2603_s2, 128  ;;  %p2655_p10 = scmp.ne.s32.totalorder %s2647_s27, 0 }
  0x75   : > { %p1895_p1 = scmp.ne.s32.totalorder %s2603_s2, %s1894_s1  ;;  %p1901_p9 = scmp.lt.u32.totalorder %s1894_s1, %s2603_s2 }
  0x77   : > { %p1897_p4 = pnand %p1895_p1, %p2655_p10 }
  0x79   : > { %p1898_p5 = pneg %p1897_p4 }
  0x7b   : > { %p1903_p13 = pnand %p1901_p9, %p1898_p5 }
  0x7d   : > { %1906 = shalt.err (!%p1903_p13)
}
  0x7e   : > { %s1907_s5 = scalar_lea.vmem %s429_s15, 128  ;;  %p1915_p0 = scmp.lt.s32.totalorder %s429_s15, %s429_s15 }
  0x7f   : > { %p1908_p2 = scmp.ne.s32.totalorder %s429_s15, %s1907_s5  ;;  %p1916_p6 = scmp.lt.s32.totalorder %s1907_s5, %s1907_s5 }
  0x81   : > { %p1910_p3 = pnand %p1908_p2, %p2655_p10  ;;  %p1917_p7 = por %p1916_p6, %p1915_p0 }
  0x83   : > { %p1911_p12 = pneg %p1910_p3 }
  0x85   : > { %p1918_p8 = pnand %p1917_p7, %p1911_p12 }
  0x87   : > { %1921 = shalt.err (!%p1918_p8)
}
  0x88   : > { %p2656_p1 = scmp.ne.s32.totalorder %s2645_s28, 0  ;;  %s2096_s7 = smov [#allocation6]  }
  0x89   : > { %s450_s10 = sshll.u32 %s2096_s7, 4  ;;  %s2379_s1 = scalar_lea.hbm %s2607_s6, %s2244_s19  ;;  %s451_s10 = int_to_ptr.vmem [resolvable:$true] %s450_s10 }
  0x8a   : > { %1729 = dma.hbm_to_vmem [thread:$0]  (!%p2656_p1), %s2603_s2, 128, %s429_s15, [#allocation3]  }
  0x8b   : > { %s1922_s21 = scalar_lea.hbm %s2605_s4, 16 }
  0x8c   : > { %p1923_p8 = scmp.ne.s32.totalorder %s2605_s4, %s1922_s21  ;;  %p1929_p9 = scmp.lt.u32.totalorder %s1922_s21, %s2605_s4 }
  0x8e   : > { %p1925_p4 = pnand %p1923_p8, %p2655_p10 }
  0x90   : > { %p1926_p5 = pneg %p1925_p4 }
  0x92   : > { %p1931_p13 = pnand %p1929_p9, %p1926_p5 }
  0x94   : > { %1934 = shalt.err (!%p1931_p13)
}
  0x95   : > { %s1935_s26 = scalar_lea.vmem %s451_s10, 16  ;;  %s1942_s7 = scalar_lea.vmem %s451_s10, 32 }
  0x96   : > { %p1936_p2 = scmp.ne.s32.totalorder %s451_s10, %s1935_s26  ;;  %p1943_p0 = scmp.lt.s32.totalorder %s451_s10, %s451_s10 }
  0x97   : > { %p1944_p6 = scmp.lt.s32.totalorder %s1942_s7, %s1935_s26 }
  0x98   : > { %p1938_p3 = pnand %p1936_p2, %p2655_p10 }
  0x99   : > { %p1945_p7 = por %p1944_p6, %p1943_p0 }
  0x9a   : > { %p1939_p12 = pneg %p1938_p3 }
  0x9c   : > { %p1946_p11 = pnand %p1945_p7, %p1939_p12 }
  0x9e   : > { %1949 = shalt.err (!%p1946_p11)
}
  0x9f   : > { %1735 = dma.hbm_to_vmem [thread:$0]  (!%p2656_p1), %s2605_s4, 16, %s451_s10, [#allocation5]  }
  0xa0   : > { %s495_s27 = scalar_lea.vmem [#allocation9], %s2241_s29  ;;  %s2404_s16 = scalar_lea.hbm %s2612_s11, %s2244_s19 }
  0xa1   : > { %s502_s8 = sshll.u32 %s495_s27, 4  ;;  %s1950_s28 = scalar_lea.hbm %s2379_s1, 16  ;;  %s503_s8 = int_to_ptr.vmem [resolvable:$true] %s502_s8 }
  0xa2   : > { %p1951_p11 = scmp.ne.s32.totalorder %s2379_s1, %s1950_s28  ;;  %p2657_p10 = scmp.ne.s32.totalorder %s2653_s25, 0 }
  0xa3   : > { %s1955_s12 = scalar_lea.hbm %s2607_s6, 32  ;;  %p1956_p1 = scmp.lt.u32.totalorder %s2379_s1, %s2607_s6 }
  0xa4   : > { %p1953_p8 = pnand %p1951_p11, %p2657_p10  ;;  %p1957_p5 = scmp.lt.u32.totalorder %s1955_s12, %s1950_s28 }
  0xa5   : > { %p1959_p13 = scmp.lt.u32.totalorder %s1950_s28, %s2379_s1 }
  0xa6   : > { %p1954_p4 = pneg %p1953_p8  ;;  %p1958_p9 = por %p1957_p5, %p1956_p1 }
  0xa8   : > { %p1960_p2 = por %p1959_p13, %p1958_p9 }
  0xaa   : > { %p1961_p3 = pnand %p1960_p2, %p1954_p4 }
  0xac   : > { %1964 = shalt.err (!%p1961_p3)
}
  0xad   : > { %s1965_s10 = scalar_lea.vmem %s503_s8, 16  ;;  %s2097_s0 = smov [#allocation9]  }
  0xae   : > { %p1966_p12 = scmp.ne.s32.totalorder %s503_s8, %s1965_s10  ;;  %s1970_s20 = sshll.u32 %s2097_s0, 4  ;;  %s1971_s20 = int_to_ptr.vmem [resolvable:$false] %s1970_s20 }
  0xaf   : > { %s1972_s27 = scalar_lea.vmem %s1971_s20, 32  ;;  %p1973_p7 = scmp.lt.s32.totalorder %s503_s8, %s1971_s20 }
  0xb0   : > { %p1968_p0 = pnand %p1966_p12, %p2657_p10  ;;  %p1974_p11 = scmp.lt.s32.totalorder %s1972_s27, %s1965_s10 }
  0xb2   : > { %p1969_p6 = pneg %p1968_p0  ;;  %p1975_p8 = por %p1974_p11, %p1973_p7 }
  0xb4   : > { %p1976_p1 = pnand %p1975_p8, %p1969_p6 }
  0xb6   : > { %1979 = shalt.err (!%p1976_p1)
}
  0xb7   : > { %p2658_p5 = scmp.ne.s32.totalorder %s2651_s14, 0  ;;  %s553_s18 = scalar_lea.vmem [#allocation12], %s2241_s29 }
  0xb8   : > { %s560_s21 = sshll.u32 %s553_s18, 4  ;;  %s1980_s28 = scalar_lea.hbm %s2404_s16, 16  ;;  %s561_s21 = int_to_ptr.vmem [resolvable:$true] %s560_s21 }
  0xb9   : > { %1742 = dma.hbm_to_vmem [thread:$0]  (!%p2658_p5), %s2379_s1, 16, %s503_s8, %s2295_s3  }
  0xba   : > { %p1981_p4 = scmp.ne.s32.totalorder %s2404_s16, %s1980_s28  ;;  %s1985_s12 = scalar_lea.hbm %s2612_s11, 32 }
  0xbb   : > { %p1986_p2 = scmp.lt.u32.totalorder %s2404_s16, %s2612_s11  ;;  %p1987_p3 = scmp.lt.u32.totalorder %s1985_s12, %s1980_s28 }
  0xbc   : > { %p1983_p9 = pnand %p1981_p4, %p2657_p10  ;;  %p1989_p0 = scmp.lt.u32.totalorder %s1980_s28, %s2404_s16 }
  0xbd   : > { %p1988_p12 = por %p1987_p3, %p1986_p2 }
  0xbe   : > { %p1984_p13 = pneg %p1983_p9 }
  0xbf   : > { %p1990_p6 = por %p1989_p0, %p1988_p12 }
  0xc1   : > { %p1991_p7 = pnand %p1990_p6, %p1984_p13 }
  0xc3   : > { %1994 = shalt.err (!%p1991_p7)
}
  0xc4   : > { %s1995_s3 = scalar_lea.vmem %s561_s21, 16  ;;  %s2098_s1 = smov [#allocation12]  }
  0xc5   : > { %p1996_p11 = scmp.ne.s32.totalorder %s561_s21, %s1995_s3  ;;  %s2000_s8 = sshll.u32 %s2098_s1, 4  ;;  %s2001_s8 = int_to_ptr.vmem [resolvable:$false] %s2000_s8 }
  0xc6   : > { %s2002_s10 = scalar_lea.vmem %s2001_s8, 32  ;;  %p2003_p4 = scmp.lt.s32.totalorder %s561_s21, %s2001_s8 }
  0xc7   : > { %p1998_p8 = pnand %p1996_p11, %p2657_p10  ;;  %p2004_p9 = scmp.lt.s32.totalorder %s2002_s10, %s1995_s3 }
  0xc9   : > { %p1999_p1 = pneg %p1998_p8  ;;  %p2005_p5 = por %p2004_p9, %p2003_p4 }
  0xcb   : > { %p2006_p2 = pnand %p2005_p5, %p1999_p1 }
  0xcd   : > { %2009 = shalt.err (!%p2006_p2)
}
  0xce   : > { %p2659_p3 = scmp.ne.s32.totalorder %s2651_s14, 0  ;;  %s2447_s27 = scalar_lea.hbm %s2614_s13, %s2244_s19 }
  0xcf   : > { %s578_s18 = scalar_lea.vmem [#allocation13], %s2241_s29  ;;  %s576_s5 = scalar_lea.sflag [#allocation14], %s2241_s29 }
  0xd0   : > { %1748 = dma.hbm_to_vmem [thread:$0]  (!%p2659_p3), %s2404_s16, 16, %s561_s21, %s2332_s22  }
  0xd1   : > { %s585_s28 = sshll.u32 %s578_s18, 4  ;;  %s2010_s15 = scalar_lea.hbm %s2447_s27, 16  ;;  %s586_s28 = int_to_ptr.vmem [resolvable:$true] %s585_s28 }
  0xd2   : > { %p2011_p5 = scmp.ne.s32.totalorder %s2447_s27, %s2010_s15  ;;  %s2015_s16 = scalar_lea.hbm %s2614_s13, 32 }
  0xd3   : > { %p2016_p0 = scmp.lt.u32.totalorder %s2447_s27, %s2614_s13  ;;  %p2017_p6 = scmp.lt.u32.totalorder %s2015_s16, %s2010_s15 }
  0xd4   : > { %p2013_p13 = pnand %p2011_p5, %p2657_p10  ;;  %p2019_p11 = scmp.lt.u32.totalorder %s2010_s15, %s2447_s27 }
  0xd5   : > { %p2018_p7 = por %p2017_p6, %p2016_p0 }
  0xd6   : > { %p2014_p12 = pneg %p2013_p13 }
  0xd7   : > { %p2020_p8 = por %p2019_p11, %p2018_p7 }
  0xd9   : > { %p2021_p1 = pnand %p2020_p8, %p2014_p12 }
  0xdb   : > { %2024 = shalt.err (!%p2021_p1)
}
  0xdc   : > { %s2025_s29 = scalar_lea.vmem %s586_s28, 16  ;;  %s2099_s26 = smov [#allocation13]  }
  0xdd   : > { %p2026_p4 = scmp.ne.s32.totalorder %s586_s28, %s2025_s29  ;;  %s2030_s7 = sshll.u32 %s2099_s26, 4  ;;  %s2031_s7 = int_to_ptr.vmem [resolvable:$false] %s2030_s7 }
  0xde   : > { %s2032_s3 = scalar_lea.vmem %s2031_s7, 32  ;;  %p2033_p5 = scmp.lt.s32.totalorder %s586_s28, %s2031_s7 }
  0xdf   : > { %p2028_p9 = pnand %p2026_p4, %p2657_p10  ;;  %p2034_p13 = scmp.lt.s32.totalorder %s2032_s3, %s2025_s29 }
  0xe1   : > { %p2029_p2 = pneg %p2028_p9  ;;  %p2035_p3 = por %p2034_p13, %p2033_p5 }
  0xe3   : > { %p2036_p0 = pnand %p2035_p3, %p2029_p2 }
  0xe5   : > { %2039 = shalt.err (!%p2036_p0)
}
  0xe6   : > { %p2660_p6 = scmp.ne.s32.totalorder %s2651_s14, 0  ;;  %p2661_p12 = scmp.ne.s32.totalorder %s2644_s24, 0 }
  0xe7   : > { %p2662_p7 = scmp.eq.s32.totalorder (!%p2661_p12), %s2198_s17, 0 }
  0xe8   : > { %1751 = dma.hbm_to_vmem [thread:$0]  (!%p2660_p6), %s2447_s27, 16, %s586_s28, %s576_s5  }
  0xe9   : > { %594 = sbr.rel (%p2661_p12) target bundleno = 1972 (0x7b4), region = 76 }
  0xf0   : > { %2057 = dma.done.wait (%p2662_p7), [#allocation3], 128   ;;  %p2663_p10 = pmov %p2662_p7 }
  0xf1   : > { %p2664_p11 = pmov %p2662_p7 }
  0xf2   : > { %2059 = vsyncadd (%p2663_p10), [#allocation3], 4294967168 }
  0xf3   : > { %2061 = dma.done.wait (%p2664_p11), [#allocation5], 144   ;;  %p2665_p8 = pmov %p2662_p7 }
  0xf4   : > { %s608_s14 = sand.u32 1, %s2198_s17   ;;  %s2480_s25 = sand.u32 1, %s2082_s30  }
  0xf5   : > { %2063 = vsyncadd (%p2665_p8), [#allocation5], 4294967152  ;;  %s609_s24 = scalar_lea.sflag [#allocation8], %s608_s14  ;;  %s611_s1 = scalar_lea.vmem [#allocation7], %s2480_s25 }
  0xf6   : > { %p2666_p3 = scmp.ne.s32.totalorder %s2643_s23, 0 }
  0xf8   : > { %2065 = dma.done.wait (%p2666_p3), %s609_s24, 32  }
  0xf9   : > { %2067 = vsyncadd (%p2666_p3), %s609_s24, 4294967264  ;;  %s619_s8 = scalar_lea.vmem [#allocation9], %s2480_s25  ;;  %s625_s10 = scalar_lea.sflag [#allocation11], %s608_s14 }
  0xfa   : > { %s627_s0 = scalar_lea.vmem [#allocation10], %s2480_s25 }
  0xfb   : > { %2069 = dma.done.wait (%p2666_p3), %s625_s10, 32  }
  0xfc   : > { %2071 = vsyncadd (%p2666_p3), %s625_s10, 4294967264  ;;  %s635_s20 = scalar_lea.vmem [#allocation12], %s2480_s25  ;;  %s641_s27 = scalar_lea.sflag [#allocation14], %s2480_s25 }
  0xfd   : > { %s643_s18 = scalar_lea.vmem [#allocation13], %s2480_s25 }
  0xfe   : > { %2073 = dma.done.wait (%p2666_p3), %s641_s27, 16  }
  0xff   : > { %2075 = vsyncadd (%p2666_p3), %s641_s27, 4294967280  ;;  %v2100_v0 = vmov 0.0   ;;  %vm2101_vm0 = vmmov 0   ;;  %vm808_vm1 = vcmask 261120   ;;  %v807_v1 = vld [vmem:[#allocation4] sm:$0xff]  ;;  %v2507_v2 = vld [vmem:[#allocation2] sm:$0xff]  ;;  %v765_v3 = vlaneseq }
 0x100   : > { %1624 = vmatprep.subr.mxu0 %v2100_v0  ;;  %1626 = vmatprep.mubr.msk.f32.mxu0 %vm2101_vm0, %v2100_v0  ;;  %v763_v5 = vld [vmem:[#allocation6] sm:$0x1]  ;;  %s2102_s23 = smov 122   ;;  %vm886_vm2 = vcmask 64512   ;;  %vm777_vm3 = vcmask 139264   ;;  %p730_p1 = scmp.lt.s32.totalorder %s2198_s17, 1 }
 0x101   : > { %1629 = vmatprep.subr.mxu1 %v2100_v0  ;;  %1631 = vmatprep.mubr.msk.f32.mxu1 %vm2101_vm0, %v2100_v0  ;;  %v766_v4 = vshrl.u32 %v765_v3, 7  ;;  %v778_v12 = vsel %vm777_vm3, %v763_v5, 0.0  ;;  %s2667_s12 = sld [smem:[#allocation23_spill]]  ;;  %vm773_vm4 = vcmask 97280   ;;  %v2103_v29 = vmov 0.0|0.0   ;;  %s2668_s29 = sld [smem:[#allocation27_spill]] }
 0x102   : > { %1625 = vmatpush3.xpose.msk.msra.mxu0 %vm808_vm1, %v807_v1  ;;  %s2680_s17 = smov (!%p730_p1, %s2198_s17), 1  ;;  %v796_v33 = vld [vmem:[%s619_s8] sm:$0x1]  ;;  %s2669_s14 = sld [smem:[#allocation28_spill]]  ;;  %vm1303_vm5 = vcmask 130048  }
 0x103   : > { %v767_v6 = vsub.s32 0, %v766_v4  ;;  %s2516_s28 = sshll.u32 %s2680_s17, 3  ;;  %s2523_s16 = sshll.u32 %s2680_s17, 5  ;;  %1684 = vmatprep.subr.bf16.mxu0 %v2103_v29  ;;  %v1583_v34 = vld [vmem:[%s611_s1] ss:$0 sm:$0xff] }
 0x104   : > { %s2670_s27 = sld [smem:[#allocation24_spill]]  ;;  %s2671_s15 = sld [smem:[#allocation29_spill]] }
 0x105   : > { %1627 = vmatmul.mubr.msk.f32.vlgmr.msra.gmra.mrb[0].mxu0 %vm808_vm1, %v2507_v2  ;;  %v768_v7 = vrot.slane %v763_v5, %v767_v6  ;;  %s2672_s19 = sld [smem:[#allocation30_spill]] }
 0x106   : > { %1653 = vmatprep.mubr.msk.f32.mxu0 %vm2101_vm0, %v2100_v0 }
 0x107   : > { %769 = vrot.lane.b32.xlu1 %v768_v7, %s2102_s23  ;;  %s733_s22 = scalar_lea.vmem %s2667_s12, %s2516_s28  ;;  %s2530_s26 = scalar_lea.vmem %s2668_s29, %s2523_s16 }
 0x108   : > { %v762_v14 = vld [vmem:[%s733_s22] sm:$0xff]  ;;  %v975_v31 = vld [vmem:[%s2530_s26 + $0x8] sm:$0xff]  ;;  %s747_s24 = scalar_lea.vmem %s2669_s14, %s2523_s16  ;;  %v976_v52 = vld [vmem:[%s2530_s26 + $0x10] sm:$0xff] }
 0x109   : > { %v974_v30 = vld [vmem:[%s2530_s26] sm:$0xff]  ;;  %v979_v43 = vld [vmem:[%s747_s24 + $0x8] sm:$0xff]  ;;  %v980_v49 = vld [vmem:[%s747_s24 + $0x10] sm:$0xff] }
 0x10a   : > { %v1685_v32 = vpack.c.bf16 %v975_v31, %v974_v30  ;;  %s737_s1 = scalar_lea.vmem %s2670_s27, %s2516_s28  ;;  %v978_v42 = vld [vmem:[%s747_s24] sm:$0xff]  ;;  %v981_v50 = vld [vmem:[%s747_s24 + $0x18] sm:$0xff]  ;;  %s752_s12 = scalar_lea.vmem %s2671_s15, %s2523_s16 }
 0x10b   : > { %v898_v45 = vld [vmem:[%s737_s1] sm:$0xff]  ;;  %v1679_v47 = vpack.c.bf16 %v979_v43, %v978_v42  ;;  %v1682_v51 = vpack.c.bf16 %v981_v50, %v980_v49  ;;  %v977_v53 = vld [vmem:[%s2530_s26 + $0x18] sm:$0xff]  ;;  %v1135_v61 = vld [vmem:[%s752_s12 + $0x8] sm:$0xff]  ;;  %s757_s29 = scalar_lea.vmem %s2672_s19, %s2523_s16 }
 0x10c   : > { %1686 = vmatpush3.bf16.msra.mxu0 %v1685_v32  ;;  %v1688_v54 = vpack.c.bf16 %v977_v53, %v976_v52  ;;  %v1134_v60 = vld [vmem:[%s752_s12] sm:$0xff]  ;;  %v1136_v63 = vld [vmem:[%s752_s12 + $0x10] sm:$0xff]  ;;  %v1137_v1 = vld [vmem:[%s752_s12 + $0x18] sm:$0xff] }
 0x10d   : > { %1687 = vmatprep.subr.bf16.mxu0 %v2103_v29  ;;  %v1691_v62 = vpack.c.bf16 %v1135_v61, %v1134_v60  ;;  %v1220_v3 = vld [vmem:[%s757_s29 + $0x8] sm:$0xff] }
 0x110   : > { %1689 = vmatpush3.bf16.msra.mxu0 %v1688_v54 }
 0x111   : > { %1696 = vmatprep.subr.bf16.mxu0 %v2103_v29 }
 0x179   : > { %v770_v13 = vpop.permute.xlu1 %769 }
 0x17a   : > { %v772_v15 = vmul.f32 %v770_v13, %v762_v14  ;;  %v1590_v14 = vld [vmem:[%s635_s20] ss:$0 sm:$0xff]  ;;  %s2673_s20 = sld [smem:[#allocation31_spill]] }
 0x17c   : > { %v774_v16 = vsel %vm773_vm4, %v772_v15, 0.0 }
 0x1d8   : > { %v881_v8 = vpop.f32.mrb[0].mxu0 }
 0x1d9   : > { %v885_v9 = vmax.f32 %v881_v8, 0.0  ;;  %v1628_v10 = vpop.f32.mrb[1].mxu0 }
 0x1db   : > { %v887_v11 = vsel %vm886_vm2, %v885_v9, -inf }
 0x1dc   : > { %888 = vmax.xlane.f32.xlu0 %v887_v11  ;;  %v1221_v11 = vld [vmem:[%s757_s29 + $0x10] sm:$0xff] }
 0x1e0   : > { %779 = vadd.xlane.f32.xlu0 %v778_v12  ;;  %v1222_v12 = vld [vmem:[%s757_s29 + $0x18] sm:$0xff] }
 0x1e1   : > { %v1700_v13 = vpack.c.bf16 %v1222_v12, %v1221_v11 }
 0x1e4   : > { %775 = vadd.xlane.f32.xlu0 %v774_v16 }
 0x269   : > { %v889_v17 = vpop.xlane.xlu0 %888 }
 0x26a   : > { %v890_v18 = vsub.f32 %v885_v9, %v889_v17 }
 0x26c   : > { %v891_v19 = vmul.f32 1.442695, %v890_v18 }
 0x26d   : > { %v780_v20 = vpop.xlane.xlu0 %779 }
 0x26e   : > { %1798 = vpow2.f32 %v891_v19  ;;  %v781_v21 = vrot.slane %v780_v20, 4  ;;  %v1592_v19 = vld [vmem:[%s643_s18] ss:$0 sm:$0xff]  ;;  %s761_s18 = scalar_lea.vmem %s2673_s20, %s2516_s28 }
 0x270   : > { %v782_v22 = vadd.f32 %v781_v21, %v780_v20 }
 0x271   : > { %v776_v35 = vpop.xlane.xlu0 %775 }
 0x272   : > { %v783_v23 = vrot.slane %v782_v22, 2  ;;  %v795_v38 = vmul.f32 %v1583_v34, %v776_v35 }
 0x274   : > { %v784_v24 = vadd.f32 %v783_v23, %v782_v22 }
 0x276   : > { %v785_v25 = vrot.slane %v784_v24, 1 }
 0x278   : > { %v1799_v26 = vpop.eup %1798  ;;  %v786_v27 = vadd.f32 %v785_v25, %v784_v24 }
 0x279   : > { %v893_v28 = vsel %vm886_vm2, %v1799_v26, 0.0 }
 0x27a   : > { %894 = vadd.xlane.f32.xlu1 %v893_v28  ;;  %1702 = vpush %v786_v27 }
 0x2ab   : > { %s1703_s17 = spop %1702 }
 0x2ac   : > { %v797_v36 = vstv %s1703_s17 }
 0x2ad   : > { %v798_v37 = vmul.f32 %v797_v36, %v796_v33 }
 0x2af   : > { %v803_v39 = vrot.slane %v798_v37, %v767_v6  ;;  %v1589_v6 = vld [vmem:[%s627_s0] ss:$0 sm:$0xff] }
 0x2b1   : > { %v805_v40 = vadd.f32 %v803_v39, %v795_v38 }
 0x2b3   : > { %1630 = vmatpush3.msra.mxu1 %v805_v40 }
 0x2b4   : > { %1678 = vmatprep.subr.bf16.mxu1 %v2103_v29 }
 0x307   : > { %v895_v41 = vpop.xlane.xlu1 %894 }
 0x308   : > { %1800 = vrcp.f32 %v895_v41 }
 0x312   : > { %v1801_v44 = vpop.eup %1800 }
 0x313   : > { %v897_v46 = vmul.f32 %v1801_v44, %v1799_v26 }
 0x315   : > { %v899_v48 = vadd.f32 %v898_v45, %v897_v46 }
 0x317   : > { %1632 = vmatmul.mubr.msk.f32.vlgmr.msra.gmra.mrb[0].mxu1 %vm886_vm2, %v899_v48 }
 0x318   : > { %1680 = vmatpush3.bf16.msra.mxu1 %v1679_v47  ;;  %1642 = vmatprep.mubr.msk.f32.mxu1 %vm2101_vm0, %v2100_v0 }
 0x319   : > { %1681 = vmatprep.subr.bf16.mxu1 %v2103_v29 }
 0x31c   : > { %1683 = vmatpush3.bf16.msra.mxu1 %v1682_v51 }
 0x31d   : > { %1690 = vmatprep.subr.bf16.mxu1 %v2103_v29 }
 0x31f   : > { %1643 = vmatmul.mubr.msk.f32.vlgmr.msra.gmra.mrb[2].mxu1 %vm808_vm1, %v2507_v2  ;;  %v1694_v2 = vpack.c.bf16 %v1137_v1, %v1136_v63 }
 0x320   : > { %1664 = vmatprep.mubr.msk.f32.mxu1 %vm2101_vm0, %v2100_v0  ;;  %1692 = vmatpush3.bf16.msra.mxu1 %v1691_v62 }
 0x321   : > { %1693 = vmatprep.subr.bf16.mxu1 %v2103_v29 }
 0x324   : > { %1695 = vmatpush3.bf16.msra.mxu1 %v1694_v2 }
 0x3ea   : > { %v969_v55 = vpop.f32.mrb[0].mxu1 }
 0x3eb   : > { %v973_v56 = vmax.f32 %v969_v55, 0.0  ;;  %v1633_v57 = vpop.f32.mrb[1].mxu1 }
 0x3ed   : > { %1654 = vmatmul.mubr.msk.f32.vlgmr.msra.gmra.mrb[2].mxu0 %vm808_vm1, %v973_v56 }
 0x3ee   : > { %1675 = vmatprep.mubr.msk.f32.mxu0 %vm2101_vm0, %v2100_v0  ;;  %v1219_v0 = vld [vmem:[%s757_s29] sm:$0xff] }
 0x3ef   : > { %v1697_v4 = vpack.c.bf16 %v1220_v3, %v1219_v0 }
 0x3f1   : > { %1698 = vmatpush3.bf16.msra.mxu0 %v1697_v4 }
 0x3f2   : > { %v1048_v58 = vpop.f32.mrb[2].mxu1  ;;  %1699 = vmatprep.subr.bf16.mxu0 %v2103_v29 }
 0x3f3   : > { %v1644_v59 = vpop.f32.mrb[3].mxu1 }
 0x3f5   : > { %1701 = vmatpush3.bf16.msra.mxu0 %v1700_v13 }
 0x4c0   : > { %v1121_v5 = vpop.f32.mrb[2].mxu0 }
 0x4c1   : > { %v1122_v7 = vadd.f32 %v1121_v5, %v1048_v58  ;;  %v1655_v8 = vpop.f32.mrb[3].mxu0 }
 0x4c3   : > { %v1132_v9 = vadd.f32 %v1589_v6, %v1122_v7 }
 0x4c5   : > { %v1133_v10 = vmax.f32 %v1132_v9, 0.0 }
 0x4c7   : > { %1665 = vmatmul.mubr.msk.f32.vlgmr.msra.gmra.mrb[4].mxu1 %vm808_vm1, %v1133_v10 }
 0x59a   : > { %v1214_v15 = vpop.f32.mrb[4].mxu1 }
 0x59b   : > { %v1215_v16 = vadd.f32 %v1590_v14, %v1214_v15  ;;  %v1666_v17 = vpop.f32.mrb[5].mxu1 }
 0x59d   : > { %v1218_v18 = vmax.f32 %v1215_v16, 0.0 }
 0x59f   : > { %1676 = vmatmul.mubr.msk.f32.vlgmr.msra.gmra.mrb[4].mxu0 %vm808_vm1, %v1218_v18 }
 0x672   : > { %v1299_v20 = vpop.f32.mrb[4].mxu0 }
 0x673   : > { %v1300_v21 = vadd.f32 %v1592_v19, %v1299_v20  ;;  %v1677_v22 = vpop.f32.mrb[5].mxu0 }
 0x675   : > { %v1304_v23 = vsel %vm1303_vm5, %v1300_v21, -inf }
 0x676   : > { %1305 = vmax.xlane.f32.xlu0 %v1304_v23 }
 0x703   : > { %v1306_v24 = vpop.xlane.xlu0 %1305 }
 0x704   : > { %v1307_v25 = vsub.f32 %v1300_v21, %v1306_v24 }
 0x706   : > { %v1308_v26 = vmul.f32 1.442695, %v1307_v25 }
 0x708   : > { %1802 = vpow2.f32 %v1308_v26 }
 0x712   : > { %v1803_v27 = vpop.eup %1802 }
 0x713   : > { %v1310_v28 = vsel %vm1303_vm5, %v1803_v27, 0.0 }
 0x714   : > { %1311 = vadd.xlane.f32.xlu0 %v1310_v28 }
 0x7a1   : > { %v1312_v29 = vpop.xlane.xlu0 %1311 }
 0x7a2   : > { %1804 = vlog2.f32 %v1312_v29 }
 0x7ac   : > { %v1805_v30 = vpop.eup %1804 }
 0x7ad   : > { %v1314_v31 = vmul.f32 0.6931472, %v1805_v30 }
 0x7af   : > { %v1315_v32 = vadd.f32 %v1314_v31, %v1306_v24 }
 0x7b1   : > { %v1316_v33 = vsub.f32 %v1300_v21, %v1315_v32 }
 0x7b3   : > { %1317 = vst.msk [vmem:[%s761_s18] sm:$0xff] %vm1303_vm5, %v1316_v33 }
 0x7b4 PF: > { %s2674_s16 = sld [smem:[#allocation21_spill]]  ;;  %s2675_s26 = sld [smem:[#allocation20_spill]] }
 0x7b5   : > { %s2676_s15 = sld [smem:[#allocation22_spill]]  ;;  %s2677_s29 = smov %s2082_s30 }
 0x7ba   : > { %p32_p4 = scmp.ge.s32.totalorder %s2674_s16, 4   ;;  %s2678_s30 = smov %s2675_s26 }
 0x7bc   :  { %34 = sbr.rel (!%p32_p4) target bundleno = 19 (0x13), region = 195 }
 0x7c3   :  { %1337 = vsyncpa [#allocation3], 1 }
 0x7c4   :  { %1339 = vsyncpa [#allocation3 + $0x1], 1 }
 0x7c5   :  { %1340 = vsyncpa [#allocation5], 1 }
 0x7c6   :  { %1341 = vsyncpa [#allocation8], 1 }
 0x7c7   :  { %1343 = vsyncpa [#allocation8 + $0x1], 1 }
 0x7c8   :  { %1344 = vsyncpa [#allocation11], 1 }
 0x7c9   :  { %1346 = vsyncpa [#allocation11 + $0x1], 1 }
 0x7ca   :  { %1347 = vsyncpa [#allocation14], 1 }
 0x7cb   :  { %1349 = vsyncpa [#allocation14 + $0x1], 1 }

</bundles_post_ra>
